<compile_context>
chip_gen: v5e
topology: v5e:2x2
jax: 0.10.0
libtpu: 0.0.40
codegen_flags: <defaults>
</compile_context>

<pallas_src>
import jax
import jax.numpy as jnp
from jax.experimental import pallas as pl
from jax.experimental.pallas import tpu as pltpu  # noqa: F401  (kept for scaling path)

BN_EPS = 1e-5


def _concat_attention_kernel(xt_ref, xi_ref, w1_ref, w2_ref, pp_ref, o_ref):
    xt = xt_ref[...]                               # [B, Dt]
    xi = xi_ref[...]                               # [B, Di]
    Dt = xt.shape[1]
    A = o_ref.shape[1]

    # Packed per-feature params (single operand, padded to width D):
    #   row 0 = BN1 gamma, row 1 = BN1 beta, row 2 = BN2 gamma, row 3 = BN2 beta
    pp = pp_ref[...]                               # [4, D]
    g1, be1 = pp[0:1, :], pp[1:2, :]               # [1, D]
    g2, be2 = pp[2:3, :A], pp[3:4, :A]             # [1, A]

    # ---- attention_layer Linear(D, D), split so MXU doesn't wait on the
    #      XLU lane-concat. Linear bias omitted: it cancels exactly under the
    #      training-mode BN mean subtraction that follows. ----
    h = (jnp.dot(xt, w1_ref[:Dt, :], preferred_element_type=jnp.float32)
         + jnp.dot(xi, w1_ref[Dt:, :], preferred_element_type=jnp.float32))

    # ---- BatchNorm1d(D), training mode (batch stats, biased variance) ----
    mean1 = jnp.mean(h, axis=0, keepdims=True)
    cen1 = h - mean1
    var1 = jnp.mean(cen1 * cen1, axis=0, keepdims=True)
    h = cen1 * jax.lax.rsqrt(var1 + BN_EPS) * g1 + be1

    # ---- ReLU ----
    h = jnp.maximum(h, 0.0)

    # ---- Softmax(dim=1) over the feature axis (exact reciprocal on EUP) ----
    m = jnp.max(h, axis=1, keepdims=True)
    e = jnp.exp(h - m)
    attn = e * pl.reciprocal(jnp.sum(e, axis=1, keepdims=True), approx=False)

    # ---- attended = attention_weights * concatenated_features ----
    # (the lane-concat of x is only needed here)
    x = jnp.concatenate([xt, xi], axis=1)          # [B, D]
    attended = attn * x

    # ---- reduce: Linear(D, A); bias again cancelled by the BN below ----
    r = jnp.dot(attended, w2_ref[...], preferred_element_type=jnp.float32)

    # ---- BatchNorm1d(A), training mode ----
    mean2 = jnp.mean(r, axis=0, keepdims=True)
    cen2 = r - mean2
    var2 = jnp.mean(cen2 * cen2, axis=0, keepdims=True)
    r = cen2 * jax.lax.rsqrt(var2 + BN_EPS) * g2 + be2

    # ---- ReLU ----
    o_ref[...] = jnp.maximum(r, 0.0).astype(o_ref.dtype)


def concat_attention(text_features, image_features, params):
    """Pallas-fused forward pass of ConcatAttention.

    text_features:  [B, Dt] float32
    image_features: [B, Di] float32
    params: dict with
        w1: [D, D]  pre-transposed Linear weight, D = Dt + Di
        w2: [D, A]  pre-transposed Linear weight
        pp: [4, D]  rows = (BN1 gamma, BN1 beta, BN2 gamma pad, BN2 beta pad)
                    (Linear biases are intentionally absent: they cancel under
                     training-mode BatchNorm.)
    returns: [B, A] float32
    """
    B, _ = text_features.shape
    A = params["w2"].shape[1]

    args = (text_features, image_features,
            params["w1"], params["w2"], params["pp"])

    # Tiny problem: everything resident in VMEM, single grid point. Full-array
    # blocks satisfy the (8,128) rule (block == full array dims).
    full = lambda arr: pl.BlockSpec(arr.shape, lambda: (0,) * arr.ndim)

    return pl.pallas_call(
        _concat_attention_kernel,
        out_shape=jax.ShapeDtypeStruct((B, A), jnp.float32),
        grid=(),
        in_specs=[full(a) for a in args],
        out_specs=pl.BlockSpec((B, A), lambda: (0, 0)),
    )(*args)


def _reference(text_features, image_features, params):
    """Pure-JAX reference with full PyTorch semantics (incl. Linear biases)."""
    x = jnp.concatenate([text_features, image_features], axis=1)
    g1, be1 = params["pp"][0:1, :], params["pp"][1:2, :]
    A = params["w2"].shape[1]
    g2, be2 = params["pp"][2:3, :A], params["pp"][3:4, :A]
    h = x @ params["w1"] + params["b1"]
    m = jnp.mean(h, axis=0, keepdims=True)
    v = jnp.mean((h - m) ** 2, axis=0, keepdims=True)
    h = (h - m) / jnp.sqrt(v + BN_EPS) * g1 + be1
    h = jnp.maximum(h, 0.0)
    attn = jax.nn.softmax(h, axis=1)
    att = attn * x
    r = att @ params["w2"] + params["b2"]
    m2 = jnp.mean(r, axis=0, keepdims=True)
    v2 = jnp.mean((r - m2) ** 2, axis=0, keepdims=True)
    r = (r - m2) / jnp.sqrt(v2 + BN_EPS) * g2 + be2
    return jnp.maximum(r, 0.0)


def init_params(key, input_dim, attention_dim):
    """Deterministic synthetic parameters, pre-packed for the kernel."""
    k1, k2, k3, k4 = jax.random.split(key, 4)
    lim = 1.0 / jnp.sqrt(input_dim)
    w1 = jax.random.uniform(k1, (input_dim, input_dim), jnp.float32, -lim, lim)
    b1 = jax.random.uniform(k2, (1, input_dim), jnp.float32, -lim, lim)
    w2 = jax.random.uniform(k3, (input_dim, attention_dim), jnp.float32, -lim, lim)
    b2 = jax.random.uniform(k4, (1, attention_dim), jnp.float32, -lim, lim)
    # BatchNorm affine params at PyTorch defaults: gamma=1, beta=0.
    g1 = jnp.ones((1, input_dim), jnp.float32)
    be1 = jnp.zeros((1, input_dim), jnp.float32)
    pad = input_dim - attention_dim
    g2 = jnp.pad(jnp.ones((1, attention_dim), jnp.float32), ((0, 0), (0, pad)))
    be2 = jnp.pad(jnp.zeros((1, attention_dim), jnp.float32), ((0, 0), (0, pad)))
    pp = jnp.concatenate([g1, be1, g2, be2], axis=0)               # [4, D]
    # b1/b2 are only used by the pure-JAX reference (they cancel under BN).
    return dict(w1=w1, w2=w2, pp=pp, b1=b1, b2=b2)


if __name__ == "__main__":
    key = jax.random.PRNGKey(0)
    k_txt, k_img, k_par = jax.random.split(key, 3)

    B = 8            # batch
    text_dim = 16    # text feature width
    image_dim = 16   # image feature width
    input_dim = text_dim + image_dim    # 32 (concat width)
    attention_dim = 16

    text_features = jax.random.normal(k_txt, (B, text_dim), jnp.float32)
    image_features = jax.random.normal(k_img, (B, image_dim), jnp.float32)
    params = init_params(k_par, input_dim, attention_dim)

    out = concat_attention(text_features, image_features, params)
    out = jax.block_until_ready(out)

    ref = _reference(text_features, image_features, params)
    assert out.shape == (B, attention_dim)
    # Exact reciprocal in the softmax; only float reassociation differences
    # (split matmul, rsqrt-mul vs div-sqrt, cancelled bias) remain.
    assert jnp.allclose(out, ref, atol=1e-3, rtol=1e-3), "mismatch vs reference"

    print("KERNEL_OK")
</pallas_src>

<mosaic_0001>
module attributes {stable_mosaic.version = 11 : i64} {
  func.func @_concat_attention_kernel(%arg0: memref<8x16xf32, #tpu.memory_space<vmem>>, %arg1: memref<8x16xf32, #tpu.memory_space<vmem>>, %arg2: memref<32x32xf32, #tpu.memory_space<vmem>>, %arg3: memref<32x16xf32, #tpu.memory_space<vmem>>, %arg4: memref<4x32xf32, #tpu.memory_space<vmem>>, %arg5: memref<8x16xf32, #tpu.memory_space<vmem>>) attributes {dimension_semantics = [], scalar_prefetch = 0 : i64, scratch_operands = 0 : i64, tpu.core_type = #tpu.core_type<tc>} {
    %c0 = arith.constant 0 : index
    %c0_0 = arith.constant 0 : index
    %0 = vector.load %arg0[%c0, %c0_0] : memref<8x16xf32, #tpu.memory_space<vmem>>, vector<8x16xf32>
    %c0_1 = arith.constant 0 : index
    %c0_2 = arith.constant 0 : index
    %1 = vector.load %arg1[%c0_1, %c0_2] : memref<8x16xf32, #tpu.memory_space<vmem>>, vector<8x16xf32>
    %c0_3 = arith.constant 0 : index
    %c0_4 = arith.constant 0 : index
    %2 = vector.load %arg4[%c0_3, %c0_4] : memref<4x32xf32, #tpu.memory_space<vmem>>, vector<4x32xf32>
    %3 = vector.extract_strided_slice %2 {offsets = [0, 0], sizes = [1, 32], strides = [1, 1]} : vector<4x32xf32> to vector<1x32xf32>
    %4 = vector.extract_strided_slice %2 {offsets = [1, 0], sizes = [1, 32], strides = [1, 1]} : vector<4x32xf32> to vector<1x32xf32>
    %5 = vector.extract_strided_slice %2 {offsets = [2, 0], sizes = [1, 16], strides = [1, 1]} : vector<4x32xf32> to vector<1x16xf32>
    %6 = vector.extract_strided_slice %2 {offsets = [3, 0], sizes = [1, 16], strides = [1, 1]} : vector<4x32xf32> to vector<1x16xf32>
    %c0_5 = arith.constant 0 : index
    %c0_6 = arith.constant 0 : index
    %7 = vector.load %arg2[%c0_5, %c0_6] : memref<32x32xf32, #tpu.memory_space<vmem>>, vector<16x32xf32>
    %cst = arith.constant dense<0.000000e+00> : vector<8x32xf32>
    %8 = tpu.matmul %0, %7, %cst {dimension_numbers = #tpu.dot_dimension_numbers<[1], [0], [0], [1], [0, 0, 1, 1], [], []>} : vector<8x16xf32>, vector<16x32xf32>, vector<8x32xf32> -> vector<8x32xf32>
    %c16 = arith.constant 16 : index
    %c0_7 = arith.constant 0 : index
    %9 = vector.load %arg2[%c16, %c0_7] : memref<32x32xf32, #tpu.memory_space<vmem>>, vector<16x32xf32>
    %cst_8 = arith.constant dense<0.000000e+00> : vector<8x32xf32>
    %10 = tpu.matmul %1, %9, %cst_8 {dimension_numbers = #tpu.dot_dimension_numbers<[1], [0], [0], [1], [0, 0, 1, 1], [], []>} : vector<8x16xf32>, vector<16x32xf32>, vector<8x32xf32> -> vector<8x32xf32>
    %11 = arith.addf %8, %10 : vector<8x32xf32>
    %cst_9 = arith.constant dense<0.000000e+00> : vector<32xf32>
    %12 = vector.multi_reduction <add>, %11, %cst_9 [0] : vector<8x32xf32> to vector<32xf32>
    %13 = vector.shape_cast %12 : vector<32xf32> to vector<1x32xf32>
    %cst_10 = arith.constant 8.000000e+00 : f32
    %14 = vector.broadcast %cst_10 : f32 to vector<1x32xf32>
    %15 = arith.divf %13, %14 : vector<1x32xf32>
    %16 = vector.broadcast %15 : vector<1x32xf32> to vector<8x32xf32>
    %17 = arith.subf %11, %16 : vector<8x32xf32>
    %18 = arith.mulf %17, %17 : vector<8x32xf32>
    %cst_11 = arith.constant dense<0.000000e+00> : vector<32xf32>
    %19 = vector.multi_reduction <add>, %18, %cst_11 [0] : vector<8x32xf32> to vector<32xf32>
    %20 = vector.shape_cast %19 : vector<32xf32> to vector<1x32xf32>
    %cst_12 = arith.constant 8.000000e+00 : f32
    %21 = vector.broadcast %cst_12 : f32 to vector<1x32xf32>
    %22 = arith.divf %20, %21 : vector<1x32xf32>
    %cst_13 = arith.constant 9.99999974E-6 : f32
    %23 = vector.broadcast %cst_13 : f32 to vector<1x32xf32>
    %24 = arith.addf %22, %23 : vector<1x32xf32>
    %25 = math.rsqrt %24 : vector<1x32xf32>
    %26 = vector.broadcast %25 : vector<1x32xf32> to vector<8x32xf32>
    %27 = arith.mulf %17, %26 : vector<8x32xf32>
    %28 = vector.broadcast %3 : vector<1x32xf32> to vector<8x32xf32>
    %29 = arith.mulf %27, %28 : vector<8x32xf32>
    %30 = vector.broadcast %4 : vector<1x32xf32> to vector<8x32xf32>
    %31 = arith.addf %29, %30 : vector<8x32xf32>
    %cst_14 = arith.constant 0.000000e+00 : f32
    %32 = vector.broadcast %cst_14 : f32 to vector<8x32xf32>
    %33 = arith.maximumf %31, %32 : vector<8x32xf32>
    %cst_15 = arith.constant dense<0xFF800000> : vector<8xf32>
    %34 = vector.multi_reduction <maximumf>, %33, %cst_15 [1] : vector<8x32xf32> to vector<8xf32>
    %35 = vector.shape_cast %34 : vector<8xf32> to vector<8x1xf32>
    %36 = vector.broadcast %35 : vector<8x1xf32> to vector<8x32xf32>
    %37 = arith.subf %33, %36 : vector<8x32xf32>
    %38 = math.exp %37 : vector<8x32xf32>
    %cst_16 = arith.constant dense<0.000000e+00> : vector<8xf32>
    %39 = vector.multi_reduction <add>, %38, %cst_16 [1] : vector<8x32xf32> to vector<8xf32>
    %40 = vector.shape_cast %39 : vector<8xf32> to vector<8x1xf32>
    %41 = tpu.reciprocal %40 : vector<8x1xf32> -> vector<8x1xf32>
    %42 = vector.broadcast %41 : vector<8x1xf32> to vector<8x32xf32>
    %43 = arith.mulf %38, %42 : vector<8x32xf32>
    %44 = tpu.concatenate %0, %1 in 1 : vector<8x16xf32>, vector<8x16xf32> -> vector<8x32xf32>
    %45 = arith.mulf %43, %44 : vector<8x32xf32>
    %c0_17 = arith.constant 0 : index
    %c0_18 = arith.constant 0 : index
    %46 = vector.load %arg3[%c0_17, %c0_18] : memref<32x16xf32, #tpu.memory_space<vmem>>, vector<32x16xf32>
    %cst_19 = arith.constant dense<0.000000e+00> : vector<8x16xf32>
    %47 = tpu.matmul %45, %46, %cst_19 {dimension_numbers = #tpu.dot_dimension_numbers<[1], [0], [0], [1], [0, 0, 1, 1], [], []>} : vector<8x32xf32>, vector<32x16xf32>, vector<8x16xf32> -> vector<8x16xf32>
    %cst_20 = arith.constant dense<0.000000e+00> : vector<16xf32>
    %48 = vector.multi_reduction <add>, %47, %cst_20 [0] : vector<8x16xf32> to vector<16xf32>
    %49 = vector.shape_cast %48 : vector<16xf32> to vector<1x16xf32>
    %cst_21 = arith.constant 8.000000e+00 : f32
    %50 = vector.broadcast %cst_21 : f32 to vector<1x16xf32>
    %51 = arith.divf %49, %50 : vector<1x16xf32>
    %52 = vector.broadcast %51 : vector<1x16xf32> to vector<8x16xf32>
    %53 = arith.subf %47, %52 : vector<8x16xf32>
    %54 = arith.mulf %53, %53 : vector<8x16xf32>
    %cst_22 = arith.constant dense<0.000000e+00> : vector<16xf32>
    %55 = vector.multi_reduction <add>, %54, %cst_22 [0] : vector<8x16xf32> to vector<16xf32>
    %56 = vector.shape_cast %55 : vector<16xf32> to vector<1x16xf32>
    %cst_23 = arith.constant 8.000000e+00 : f32
    %57 = vector.broadcast %cst_23 : f32 to vector<1x16xf32>
    %58 = arith.divf %56, %57 : vector<1x16xf32>
    %cst_24 = arith.constant 9.99999974E-6 : f32
    %59 = vector.broadcast %cst_24 : f32 to vector<1x16xf32>
    %60 = arith.addf %58, %59 : vector<1x16xf32>
    %61 = math.rsqrt %60 : vector<1x16xf32>
    %62 = vector.broadcast %61 : vector<1x16xf32> to vector<8x16xf32>
    %63 = arith.mulf %53, %62 : vector<8x16xf32>
    %64 = vector.broadcast %5 : vector<1x16xf32> to vector<8x16xf32>
    %65 = arith.mulf %63, %64 : vector<8x16xf32>
    %66 = vector.broadcast %6 : vector<1x16xf32> to vector<8x16xf32>
    %67 = arith.addf %65, %66 : vector<8x16xf32>
    %cst_25 = arith.constant 0.000000e+00 : f32
    %68 = vector.broadcast %cst_25 : f32 to vector<8x16xf32>
    %69 = arith.maximumf %67, %68 : vector<8x16xf32>
    %c0_26 = arith.constant 0 : index
    %c0_27 = arith.constant 0 : index
    %70 = vector.load %arg5[%c0_26, %c0_27] : memref<8x16xf32, #tpu.memory_space<vmem>>, vector<8x16xf32>
    tpu.vector_store %arg5[%c0_26, %c0_27], %69 {strides = array<i32>} : memref<8x16xf32, #tpu.memory_space<vmem>>, vector<8x16xf32>,
    return
  }
}

</mosaic_0001>

<bundles_post_ra>
// kernel: tpu_custom_call.1
= control target key start
LH: loop header
LB: loop body
LE: loop exit
PB: predicated region body
PF: predicated region fallthrough
CT: control target
= control target key end

     0   :  { %10 = vsyncpa [#allocation3], 0  ;;  %s407_s0 = inlined_call_operand.vmem [shape: f32[8,16], index: 0, kind: input, shape index: {}]   ;;  %s408_s1 = inlined_call_operand.vmem [shape: f32[8,16], index: 1, kind: input, shape index: {}]   ;;  %s409_s2 = inlined_call_operand.vmem [shape: f32[32,32], index: 2, kind: input, shape index: {}]   ;;  %s410_s3 = inlined_call_operand.vmem [shape: f32[32,16], index: 3, kind: input, shape index: {}]   ;;  %s411_s4 = inlined_call_operand.hbm [shape: f32[4,32], index: 4, kind: input, shape index: {}]   ;;  %s412_s5 = inlined_call_operand.hbm [shape: f32[8,16], index: 5, kind: output, shape index: {}]  }
   0x1   :  { %11 = vsyncpa [#allocation4], 0  ;;  %s25_s20 = sshll.u32 %s411_s4, 4  ;;  %s310_s21 = smov [#allocation2]   ;;  %s26_s20 = int_to_ptr.hbm [resolvable:$true] %s25_s20 }
   0x2   :  { %s27_s22 = sshll.u32 %s310_s21, 4  ;;  %s28_s22 = int_to_ptr.vmem [resolvable:$true] %s27_s22 }
   0x3   :  { %30 = dma.hbm_to_vmem [thread:$0]  %s26_s20, 64, %s28_s22, [#allocation3]  }
   0x4   :  { %306 = dma.done.wait [#allocation3], 64  }
   0x5   :  { %307 = vsyncadd [#allocation3], 4294967232  ;;  %v41_v0 = vld [vmem:[%s409_s2 + $0x18] sm:$0xff]  ;;  %v39_v1 = vld [vmem:[%s409_s2 + $0x8] sm:$0xff]  ;;  %vm42_vm0 = vcmask 130048   ;;  %v311_v6 = vmov 8.0  }
   0x6   :  { %v40_v2 = vld [vmem:[%s409_s2 + $0x10] sm:$0xff]  ;;  %60 = vmatpush.msra.mxu0 %v41_v0  ;;  %83 = vmatpush.msra.mxu1 %v39_v1  ;;  %v38_v3 = vld [vmem:[%s409_s2] sm:$0xff]  ;;  %248 = vrcp.f32 %v311_v6  ;;  %vm89_vm1 = vcmask 261120   ;;  %v164_v55 = vld [vmem:[%s410_s3 + $0x18] sm:$0xff]  ;;  %s231_s18 = sshll.u32 %s412_s5, 4  ;;  %s232_s18 = int_to_ptr.hbm [resolvable:$true] %s231_s18 }
   0x7   :  { %v36_v4 = vld [vmem:[%s408_s1] sm:$0xff]  ;;  %v163_v56 = vld [vmem:[%s410_s3 + $0x10] sm:$0xff]  ;;  %180 = vmatpush.msra.mxu2 %v164_v55  ;;  %v162_v57 = vld [vmem:[%s410_s3 + $0x8] sm:$0xff] }
   0x8   :  { %v365_v5 = vld [vmem:[%s407_s0] sm:$0xff]  ;;  %61 = vmatpush.msra.mxu0 %v40_v2  ;;  %84 = vmatpush.msra.mxu1 %v38_v3  ;;  %s312_s0 = smov 16  }
   0x9   :  { %241 = vmatmul.msk.f32.vlgmr.msra.gmra.mxu0 %vm42_vm0, %v36_v4  ;;  %242 = vmatmul.msk.f32.vlgmr.msra.gmra.mxu1 %vm42_vm0, %v365_v5  ;;  %v376_v40 = vld [vmem:[#allocation2] sm:$0xf] }
   0xa   :  { %v127_v42 = vperm.slane %v376_v40, 0  ;;  %v129_v45 = vperm.slane %v376_v40, 1  ;;  %156 = vrot.lane.b32.xlu1 %v36_v4, %s312_s0  ;;  %181 = vmatpush.msra.mxu2 %v163_v56  ;;  %v161_v58 = vld [vmem:[%s410_s3] sm:$0xff]  ;;  %s313_s3 = smov [#allocation5]  }
   0xb   :  { %s229_s15 = sshll.u32 %s313_s3, 4  ;;  %s230_s15 = int_to_ptr.vmem [resolvable:$true] %s229_s15 }
   0xc   :  { %v249_v7 = vpop.eup %248  ;;  %182 = vmatpush.msra.mxu2 %v162_v57 }
   0xd   :  { %v98_v8 = vmul.f32 8.0, %v249_v7  ;;  %vm102_vm2 = vweird.f32 %v249_v7 }
   0xe   :  { %183 = vmatpush.msra.mxu2 %v161_v58 }
   0xf   :  { %v99_v12 = vsub.f32 1.0, %v98_v8 }
  0x11   :  { %v100_v15 = vmul.f32 %v249_v7, %v99_v12 }
  0x13   :  { %v101_v18 = vadd.f32 %v249_v7, %v100_v15 }
  0x15   :  { %v371_v21 = vsel %vm102_vm2, %v249_v7, %v101_v18 }
  0x7c   :  { %v157_v3 = vpop.permute.xlu1 %156 }
  0x7d   :  { %v159_v8 = vsel %vm42_vm0, %v365_v5, %v157_v3 }
  0x86   :  { %v63_v9 = vpop.f32.mrf.mxu0  ;;  %v86_v10 = vpop.f32.mrf.mxu1 }
  0x87   :  { %v87_v11 = vadd.f32 %v86_v10, %v63_v9 }
  0x89   :  { %v90_v13 = vsel %vm89_vm1, %v87_v11, 0.0 }
  0x8a   :  { %v91_v14 = vrot.slane %v90_v13, 4 }
  0x8c   :  { %v92_v16 = vadd.f32 %v91_v14, %v90_v13 }
  0x8e   :  { %v93_v17 = vrot.slane %v92_v16, 2 }
  0x90   :  { %v94_v19 = vadd.f32 %v93_v17, %v92_v16 }
  0x92   :  { %v95_v20 = vrot.slane %v94_v19, 1 }
  0x94   :  { %v96_v22 = vadd.f32 %v95_v20, %v94_v19 }
  0x96   :  { %v104_v23 = vmul.f32 %v371_v21, %v96_v22 }
  0x98   :  { %v105_v24 = vsub.f32 %v87_v11, %v104_v23 }
  0x9a   :  { %v106_v25 = vmul.f32 %v105_v24, %v105_v24 }
  0x9c   :  { %v107_v26 = vsel %vm89_vm1, %v106_v25, 0.0 }
  0x9d   :  { %v108_v27 = vrot.slane %v107_v26, 4 }
  0x9f   :  { %v109_v28 = vadd.f32 %v108_v27, %v107_v26 }
  0xa1   :  { %v110_v29 = vrot.slane %v109_v28, 2 }
  0xa3   :  { %v111_v30 = vadd.f32 %v110_v29, %v109_v28 }
  0xa5   :  { %v112_v31 = vrot.slane %v111_v30, 1 }
  0xa7   :  { %v113_v32 = vadd.f32 %v112_v31, %v111_v30 }
  0xa9   :  { %v114_v33 = vmul.f32 %v113_v32, %v371_v21 }
  0xab   :  { %v115_v34 = vadd.f32 1e-05, %v114_v33 }
  0xad   :  { %250 = vrsqrt.f32 %v115_v34  ;;  %vm122_vm4 = vweird.f32 %v115_v34 }
  0xb3   :  { %v251_v35 = vpop.eup %250 }
  0xb4   :  { %v117_v36 = vmul.f32 %v251_v35, %v115_v34  ;;  %vm123_vm3 = vweird.f32 %v251_v35 }
  0xb5   :  { %vm124_vm5 = vmor %vm122_vm4, %vm123_vm3 }
  0xb6   :  { %v118_v37 = vmul.f32 %v251_v35, %v117_v36 }
  0xb8   :  { %v119_v38 = vmul.f32 0.5, %v118_v37  ;;  %v218_v37 = vperm.slane %v376_v40, 2 }
  0xba   :  { %v120_v39 = vsub.f32 1.5, %v119_v38 }
  0xbc   :  { %v121_v41 = vmul.f32 %v251_v35, %v120_v39 }
  0xbe   :  { %v125_v43 = vsel %vm124_vm5, %v251_v35, %v121_v41  ;;  %v220_v41 = vperm.slane %v376_v40, 3 }
  0xbf   :  { %v126_v44 = vmul.f32 %v125_v43, %v105_v24 }
  0xc1   :  { %v128_v46 = vmul.f32 %v127_v42, %v126_v44 }
  0xc3   :  { %v130_v47 = vadd.f32 %v129_v45, %v128_v46 }
  0xc5   :  { %v131_v48 = vmax.f32 %v130_v47, 0.0 }
  0xc7   :  { %v132_v49 = vsel %vm89_vm1, %v131_v48, -inf }
  0xc8   :  { %133 = vmax.xlane.f32.xlu0 %v132_v49 }
 0x13b   :  { %v134_v50 = vpop.xlane.xlu0 %133 }
 0x13c   :  { %v135_v51 = vsub.f32 %v131_v48, %v134_v50 }
 0x13e   :  { %v136_v52 = vmul.f32 1.442695, %v135_v51 }
 0x140   :  { %252 = vpow2.f32 %v136_v52 }
 0x146   :  { %v253_v53 = vpop.eup %252 }
 0x147   :  { %v138_v54 = vsel %vm89_vm1, %v253_v53, 0.0 }
 0x148   :  { %139 = vadd.xlane.f32.xlu0 %v138_v54 }
 0x1bb   :  { %v140_v59 = vpop.xlane.xlu0 %139 }
 0x1bc   :  { %254 = vrcp.f32 %v140_v59  ;;  %v152_v63 = vand.u32 2147483648, %v140_v59  ;;  %v150_v1 = vand.u32 2147483647, %v140_v59  ;;  %vm146_vm7 = vweird.f32 %v140_v59 }
 0x1be   :  { %v153_v4 = vor.u32 1.1754944e-38, %v152_v63  ;;  %vm151_vm9 = vcmp.eq.f32.partialorder %v150_v1, 8.507059e+37 }
 0x1c2   :  { %v255_v60 = vpop.eup %254 }
 0x1c3   :  { %v142_v61 = vmul.f32 %v255_v60, %v140_v59  ;;  %vm147_vm6 = vweird.f32 %v255_v60 }
 0x1c4   :  { %vm148_vm8 = vmor %vm146_vm7, %vm147_vm6 }
 0x1c5   :  { %v143_v62 = vsub.f32 1.0, %v142_v61 }
 0x1c7   :  { %v144_v0 = vmul.f32 %v255_v60, %v143_v62 }
 0x1c9   :  { %v145_v2 = vadd.f32 %v255_v60, %v144_v0 }
 0x1cb   :  { %v149_v6 = vsel %vm148_vm8, %v255_v60, %v145_v2 }
 0x1cc   :  { %v154_v7 = vsel %vm151_vm9, %v153_v4, %v149_v6 }
 0x1cd   :  { %v155_v9 = vmul.f32 %v253_v53, %v154_v7 }
 0x1cf   :  { %v160_v10 = vmul.f32 %v159_v8, %v155_v9 }
 0x1d1   :  { %243 = vmatmul.msk.f32.vlgmr.msra.gmra.mxu2 %vm89_vm1, %v160_v10 }
 0x254   :  { %v185_v11 = vpop.f32.mrf.mxu2 }
 0x255   :  { %v188_v12 = vsel %vm42_vm0, %v185_v11, 0.0 }
 0x256   :  { %v189_v13 = vrot.slane %v188_v12, 4 }
 0x258   :  { %v190_v14 = vadd.f32 %v189_v13, %v188_v12 }
 0x25a   :  { %v191_v15 = vrot.slane %v190_v14, 2 }
 0x25c   :  { %v192_v16 = vadd.f32 %v191_v15, %v190_v14 }
 0x25e   :  { %v193_v17 = vrot.slane %v192_v16, 1 }
 0x260   :  { %v194_v18 = vadd.f32 %v193_v17, %v192_v16 }
 0x262   :  { %v195_v19 = vmul.f32 %v194_v18, %v371_v21 }
 0x264   :  { %v196_v20 = vsub.f32 %v185_v11, %v195_v19 }
 0x266   :  { %v197_v22 = vmul.f32 %v196_v20, %v196_v20 }
 0x268   :  { %v198_v23 = vsel %vm42_vm0, %v197_v22, 0.0 }
 0x269   :  { %v199_v5 = vrot.slane %v198_v23, 4 }
 0x26b   :  { %v200_v24 = vadd.f32 %v199_v5, %v198_v23 }
 0x26d   :  { %v201_v25 = vrot.slane %v200_v24, 2 }
 0x26f   :  { %v202_v26 = vadd.f32 %v201_v25, %v200_v24 }
 0x271   :  { %v203_v27 = vrot.slane %v202_v26, 1 }
 0x273   :  { %v204_v28 = vadd.f32 %v203_v27, %v202_v26 }
 0x275   :  { %v205_v29 = vmul.f32 %v204_v28, %v371_v21 }
 0x277   :  { %v206_v30 = vadd.f32 1e-05, %v205_v29 }
 0x279   :  { %256 = vrsqrt.f32 %v206_v30  ;;  %vm213_vm11 = vweird.f32 %v206_v30 }
 0x27f   :  { %v257_v31 = vpop.eup %256 }
 0x280   :  { %v208_v32 = vmul.f32 %v257_v31, %v206_v30  ;;  %vm214_vm10 = vweird.f32 %v257_v31 }
 0x281   :  { %vm215_vm12 = vmor %vm213_vm11, %vm214_vm10 }
 0x282   :  { %v209_v33 = vmul.f32 %v257_v31, %v208_v32 }
 0x284   :  { %v210_v34 = vmul.f32 0.5, %v209_v33 }
 0x286   :  { %v211_v35 = vsub.f32 1.5, %v210_v34 }
 0x288   :  { %v212_v36 = vmul.f32 %v257_v31, %v211_v35 }
 0x28a   :  { %v216_v38 = vsel %vm215_vm12, %v257_v31, %v212_v36 }
 0x28b   :  { %v217_v39 = vmul.f32 %v216_v38, %v196_v20 }
 0x28d   :  { %v219_v42 = vmul.f32 %v218_v37, %v217_v39 }
 0x28f   :  { %v221_v21 = vadd.f32 %v220_v41, %v219_v42 }
 0x291   :  { %v222_v43 = vmax.f32 %v221_v21, 0.0 }
 0x293   :  { %223 = vst.msk [vmem:[#allocation5] sm:$0xff] %vm42_vm0, %v222_v43 }
 0x294   :  { %234 = dma.vmem_to_hbm [thread:$0]  %s230_s15, 128, %s232_s18, [#allocation4]  }
 0x295   :  { %308 = dma.done.wait [#allocation4], 128  }
 0x296   :  { %309 = vsyncadd [#allocation4], 4294967168 }
 0x297   :  { %239 = vsyncpa [#allocation3], 1 }
 0x298   :  { %240 = vsyncpa [#allocation4], 1 }

</bundles_post_ra>
